<compile_context>
chip_gen: v7x
topology: tpu7x:2x2x1
jax: 0.10.0
libtpu: 0.0.40
codegen_flags: <defaults>
</compile_context>

<pallas_src>
import functools

import jax
import jax.numpy as jnp
from jax.experimental import pallas as pl
from jax.experimental.pallas import tpu as pltpu


def _round_up(n: int, m: int) -> int:
    return ((n + m - 1) // m) * m


def mlp_kernel(x_ref, w1_ref, b1_ref, w2_ref, b2_ref, o_ref):
    # First linear: [TB, 100] @ [100, 64] with f32 accumulation on the MXU.
    h = jnp.dot(x_ref[...], w1_ref[...], preferred_element_type=jnp.float32)
    # Bias + ReLU in f32 on the VPU.
    h = jnp.maximum(h + b1_ref[...], 0.0)
    # Second linear: keep h in f32; w2 is tiny (64x2), cast it up in-register.
    out = jnp.dot(h, w2_ref[...].astype(jnp.float32),
                  preferred_element_type=jnp.float32)
    o_ref[...] = (out + b2_ref[...]).astype(o_ref.dtype)


@functools.partial(jax.jit, static_argnames=("block_rows",))
def mlp_forward(x, w1, b1, w2, b2, *, block_rows=2048):
    B, K = x.shape
    K2, H = w1.shape
    H2, N = w2.shape
    assert K == K2 and H == H2

    # Rows per grid step: big tiles amortize per-step overhead, but cap at
    # ceil(B/2) (rounded to a sublane multiple of 8) so there are >=2 grid steps
    # whenever possible (lets v7x shard the batch axis over both TensorCores).
    half = -(-B // 2)
    TB = min(block_rows, _round_up(half, 8))
    if TB > B:
        TB = B  # tiny batch: single block equal to the full dim (always legal)
    grid = (pl.cdiv(B, TB),)  # ragged last block; OOB rows masked on write-back

    # Homogenize dtypes for the first matmul (weights are tiny; x is untouched).
    w1_c = w1.astype(x.dtype)
    w2_c = w2.astype(jnp.float32)
    b1_2d = b1.reshape(1, H).astype(jnp.float32)
    b2_2d = b2.reshape(1, N).astype(jnp.float32)

    out = pl.pallas_call(
        mlp_kernel,
        out_shape=jax.ShapeDtypeStruct((B, N), jnp.float32),
        grid_spec=pltpu.PrefetchScalarGridSpec(
            num_scalar_prefetch=0,
            grid=grid,
            in_specs=[
                # x: one (TB, 100) tile per step (double-buffered DMA, unpadded).
                pl.BlockSpec((TB, K), lambda i: (i, 0)),
                # Weights/biases: same block every step -> resident in VMEM.
                pl.BlockSpec((K, H), lambda i: (0, 0)),
                pl.BlockSpec((1, H), lambda i: (0, 0)),
                pl.BlockSpec((H, N), lambda i: (0, 0)),
                pl.BlockSpec((1, N), lambda i: (0, 0)),
            ],
            # Skinny (TB, 2) output block: last dim equals the full array dim.
            out_specs=pl.BlockSpec((TB, N), lambda i: (i, 0)),
        ),
        compiler_params=pltpu.CompilerParams(
            # Batch axis is embarrassingly parallel (v7x 2-TC sharding).
            dimension_semantics=("parallel",),
            # TB<=2048 keeps the double-buffered footprint far below this on
            # every generation (incl. v7x's 64 MiB physical VMEM).
            vmem_limit_bytes=32 * 1024 * 1024,
        ),
    )(x, w1_c, b1_2d, w2_c, b2_2d)
    return out


def init_params(key, in_dim=100, hidden=64, out_dim=2):
    # Deterministic init mimicking PyTorch's uniform(-1/sqrt(fan_in), 1/sqrt(fan_in)).
    k1, k2, k3, k4 = jax.random.split(key, 4)
    bound1 = 1.0 / jnp.sqrt(in_dim)
    bound2 = 1.0 / jnp.sqrt(hidden)
    w1 = jax.random.uniform(k1, (in_dim, hidden), jnp.float32, -bound1, bound1)
    b1 = jax.random.uniform(k2, (hidden,), jnp.float32, -bound1, bound1)
    w2 = jax.random.uniform(k3, (hidden, out_dim), jnp.float32, -bound2, bound2)
    b2 = jax.random.uniform(k4, (out_dim,), jnp.float32, -bound2, bound2)
    return w1, b1, w2, b2


if __name__ == "__main__":
    key = jax.random.PRNGKey(0)
    k_x, k_p = jax.random.split(key)

    batch = 8
    x = jax.random.normal(k_x, (batch, 100), jnp.float32)
    w1, b1, w2, b2 = init_params(k_p)

    ref = jnp.maximum(x @ w1 + b1, 0.0) @ w2 + b2

    # f32 path: exact (modulo MXU f32 rounding).
    out_f32 = jax.block_until_ready(mlp_forward(x, w1, b1, w2, b2))
    assert out_f32.shape == (batch, 2)
    assert jnp.allclose(out_f32, ref, atol=1e-5, rtol=1e-5)

    # bf16 x / w1 with f32 accumulation and f32 activations for the 2nd matmul
    # (recommended large-batch path on bandwidth-poor v5e).
    out_bf16 = jax.block_until_ready(
        mlp_forward(x.astype(jnp.bfloat16), w1, b1, w2, b2))
    assert out_bf16.shape == (batch, 2)
    assert jnp.allclose(out_bf16, ref, atol=5e-2, rtol=5e-2)

    # Ragged batch: 13 rows -> TB=8, 2 grid steps, partial last block.
    x13 = jax.random.normal(k_x, (13, 100), jnp.float32)
    ref13 = jnp.maximum(x13 @ w1 + b1, 0.0) @ w2 + b2
    out13 = jax.block_until_ready(mlp_forward(x13, w1, b1, w2, b2))
    assert out13.shape == (13, 2)
    assert jnp.allclose(out13, ref13, atol=1e-5, rtol=1e-5)

    print("KERNEL_OK")
</pallas_src>

<mosaic_0001>
module attributes {stable_mosaic.version = 11 : i64} {
  func.func @mlp_kernel(%arg0: i32, %arg1: memref<8x100xf32, #tpu.memory_space<vmem>>, %arg2: memref<100x64xf32, #tpu.memory_space<vmem>>, %arg3: memref<1x64xf32, #tpu.memory_space<vmem>>, %arg4: memref<64x2xf32, #tpu.memory_space<vmem>>, %arg5: memref<1x2xf32, #tpu.memory_space<vmem>>, %arg6: memref<8x2xf32, #tpu.memory_space<vmem>>) attributes {dimension_semantics = [#tpu.dimension_semantics<parallel>], iteration_bounds = array<i64: 1>, scalar_prefetch = 0 : i64, scratch_operands = 0 : i64, tpu.core_type = #tpu.core_type<tc>, window_params = [{transform_indices = @transform_0, window_bounds = array<i64: 8, 100>}, {pipeline_mode = #tpu.pipeline_mode<synchronous>, transform_indices = @transform_1, window_bounds = array<i64: 100, 64>}, {pipeline_mode = #tpu.pipeline_mode<synchronous>, transform_indices = @transform_2, window_bounds = array<i64: 1, 64>}, {pipeline_mode = #tpu.pipeline_mode<synchronous>, transform_indices = @transform_3, window_bounds = array<i64: 64, 2>}, {pipeline_mode = #tpu.pipeline_mode<synchronous>, transform_indices = @transform_4, window_bounds = array<i64: 1, 2>}, {transform_indices = @transform_5, window_bounds = array<i64: 8, 2>}]} {
    %c0 = arith.constant 0 : index
    %c0_0 = arith.constant 0 : index
    %0 = vector.load %arg1[%c0, %c0_0] : memref<8x100xf32, #tpu.memory_space<vmem>>, vector<8x100xf32>
    %c0_1 = arith.constant 0 : index
    %c0_2 = arith.constant 0 : index
    %1 = vector.load %arg2[%c0_1, %c0_2] : memref<100x64xf32, #tpu.memory_space<vmem>>, vector<100x64xf32>
    %cst = arith.constant dense<0.000000e+00> : vector<8x64xf32>
    %2 = tpu.matmul %0, %1, %cst {dimension_numbers = #tpu.dot_dimension_numbers<[1], [0], [0], [1], [0, 0, 1, 1], [], []>} : vector<8x100xf32>, vector<100x64xf32>, vector<8x64xf32> -> vector<8x64xf32>
    %c0_3 = arith.constant 0 : index
    %c0_4 = arith.constant 0 : index
    %3 = vector.load %arg3[%c0_3, %c0_4] : memref<1x64xf32, #tpu.memory_space<vmem>>, vector<1x64xf32>
    %4 = vector.broadcast %3 : vector<1x64xf32> to vector<8x64xf32>
    %5 = arith.addf %2, %4 : vector<8x64xf32>
    %cst_5 = arith.constant 0.000000e+00 : f32
    %6 = vector.broadcast %cst_5 : f32 to vector<8x64xf32>
    %7 = arith.maximumf %5, %6 : vector<8x64xf32>
    %c0_6 = arith.constant 0 : index
    %c0_7 = arith.constant 0 : index
    %8 = vector.load %arg4[%c0_6, %c0_7] : memref<64x2xf32, #tpu.memory_space<vmem>>, vector<64x2xf32>
    %cst_8 = arith.constant dense<0.000000e+00> : vector<8x2xf32>
    %9 = tpu.matmul %7, %8, %cst_8 {dimension_numbers = #tpu.dot_dimension_numbers<[1], [0], [0], [1], [0, 0, 1, 1], [], []>} : vector<8x64xf32>, vector<64x2xf32>, vector<8x2xf32> -> vector<8x2xf32>
    %c0_9 = arith.constant 0 : index
    %c0_10 = arith.constant 0 : index
    %10 = vector.load %arg5[%c0_9, %c0_10] : memref<1x2xf32, #tpu.memory_space<vmem>>, vector<1x2xf32>
    %11 = vector.broadcast %10 : vector<1x2xf32> to vector<8x2xf32>
    %12 = arith.addf %9, %11 : vector<8x2xf32>
    %c0_11 = arith.constant 0 : index
    %c0_12 = arith.constant 0 : index
    %13 = vector.load %arg6[%c0_11, %c0_12] : memref<8x2xf32, #tpu.memory_space<vmem>>, vector<8x2xf32>
    tpu.vector_store %arg6[%c0_11, %c0_12], %12 {strides = array<i32>} : memref<8x2xf32, #tpu.memory_space<vmem>>, vector<8x2xf32>,
    return
  }
  func.func @transform_0(%arg0: i32) -> (i32, i32) {
    %c0_i32 = arith.constant 0 : i32
    %c0_i32_0 = arith.constant 0 : i32
    return %arg0, %c0_i32 : i32, i32
  }
  func.func @transform_1(%arg0: i32) -> (i32, i32) {
    %c0_i32 = arith.constant 0 : i32
    %c0_i32_0 = arith.constant 0 : i32
    %c0_i32_1 = arith.constant 0 : i32
    return %c0_i32, %c0_i32_0 : i32, i32
  }
  func.func @transform_2(%arg0: i32) -> (i32, i32) {
    %c0_i32 = arith.constant 0 : i32
    %c0_i32_0 = arith.constant 0 : i32
    %c0_i32_1 = arith.constant 0 : i32
    return %c0_i32, %c0_i32_0 : i32, i32
  }
  func.func @transform_3(%arg0: i32) -> (i32, i32) {
    %c0_i32 = arith.constant 0 : i32
    %c0_i32_0 = arith.constant 0 : i32
    %c0_i32_1 = arith.constant 0 : i32
    return %c0_i32, %c0_i32_0 : i32, i32
  }
  func.func @transform_4(%arg0: i32) -> (i32, i32) {
    %c0_i32 = arith.constant 0 : i32
    %c0_i32_0 = arith.constant 0 : i32
    %c0_i32_1 = arith.constant 0 : i32
    return %c0_i32, %c0_i32_0 : i32, i32
  }
  func.func @transform_5(%arg0: i32) -> (i32, i32) {
    %c0_i32 = arith.constant 0 : i32
    %c0_i32_0 = arith.constant 0 : i32
    return %arg0, %c0_i32 : i32, i32
  }
}

</mosaic_0001>

<bundles_post_ra>
// kernel: mlp_forward.1
= control target key start
LH: loop header
LB: loop body
LE: loop exit
PB: predicated region body
PF: predicated region fallthrough
CT: control target
= control target key end

     0   :  { %v324_v0 = vmov 0.0|0.0   ;;  %vm325_vm0 = vmmov 0   ;;  %v326_v4 = vmov 0.0   ;;  %vm45_vm1 = vcmask 1043456   ;;  %s432_s1 = inlined_call_operand.vmem [shape: f32[100,64], index: 1, kind: input, shape index: {}]   ;;  %s433_s3 = inlined_call_operand.vmem [shape: f32[64,2], index: 3, kind: input, shape index: {}]   ;;  %s434_s0 = inlined_call_operand.vmem [shape: f32[8,100], index: 0, kind: input, shape index: {}]   ;;  %s435_s2 = inlined_call_operand.vmem [shape: f32[1,64], index: 2, kind: input, shape index: {}]   ;;  %s436_s4 = inlined_call_operand.vmem [shape: f32[1,2], index: 4, kind: input, shape index: {}]   ;;  %s437_s5 = inlined_call_operand.vmem [shape: f32[8,2], index: 5, kind: output, shape index: {}]  }
   0x1   :  { %291 = vmatprep.subr.bf16.mxu0 %v324_v0  ;;  %v21_v1 = vld [vmem:[%s432_s1] sm:$0xff]  ;;  %v22_v2 = vld [vmem:[%s432_s1 + $0x8] sm:$0xff]  ;;  %v23_v3 = vld [vmem:[%s432_s1 + $0x10] sm:$0xff]  ;;  %269 = vmatprep.mubr.msk.f32.mxu0 %vm325_vm0, %v326_v4  ;;  %vm41_vm2 = vcmask 818176   ;;  %vm135_vm3 = vcmask 523264   ;;  %vm209_vm4 = vcmask 15360  }
   0x2   :  { %v292_v5 = vpack.c.bf16 %v22_v2, %v21_v1  ;;  %v24_v6 = vld [vmem:[%s432_s1 + $0x18] sm:$0xff]  ;;  %309 = vmatprep.subr.bf16.mxu1 %v324_v0  ;;  %288 = vmatprep.mubr.msk.f32.mxu1 %vm325_vm0, %v326_v4  ;;  %v25_v8 = vld [vmem:[%s432_s1 + $0x20] sm:$0xff]  ;;  %v26_v9 = vld [vmem:[%s432_s1 + $0x28] sm:$0xff] }
   0x3   :  { %v295_v7 = vpack.c.bf16 %v24_v6, %v23_v3  ;;  %v120_v10 = vld [vmem:[%s433_s3] sm:$0xff]  ;;  %v121_v11 = vld [vmem:[%s433_s3 + $0x8] sm:$0xff]  ;;  %v122_v12 = vld [vmem:[%s433_s3 + $0x10] sm:$0xff]  ;;  %v298_v15 = vpack.c.bf16 %v26_v9, %v25_v8 }
   0x4   :  { %293 = vmatpush3.bf16.msra.mxu0 %v292_v5  ;;  %v123_v13 = vld [vmem:[%s433_s3 + $0x18] sm:$0xff]  ;;  %v310_v14 = vpack.c.bf16 %v121_v11, %v120_v10  ;;  %v27_v16 = vld [vmem:[%s432_s1 + $0x30] sm:$0xff]  ;;  %v124_v19 = vld [vmem:[%s433_s3 + $0x20] sm:$0xff] }
   0x5   :  { %294 = vmatprep.subr.bf16.mxu0 %v324_v0  ;;  %v28_v17 = vld [vmem:[%s432_s1 + $0x38] sm:$0xff]  ;;  %v313_v18 = vpack.c.bf16 %v123_v13, %v122_v12  ;;  %v125_v20 = vld [vmem:[%s433_s3 + $0x28] sm:$0xff]  ;;  %v29_v22 = vld [vmem:[%s432_s1 + $0x40] sm:$0xff] }
   0x6   :  { %311 = vmatpush3.bf16.msra.mxu1 %v310_v14  ;;  %v301_v21 = vpack.c.bf16 %v28_v17, %v27_v16  ;;  %v30_v23 = vld [vmem:[%s432_s1 + $0x48] sm:$0xff]  ;;  %v316_v24 = vpack.c.bf16 %v125_v20, %v124_v19  ;;  %v31_v26 = vld [vmem:[%s432_s1 + $0x50] sm:$0xff]  ;;  %v32_v27 = vld [vmem:[%s432_s1 + $0x58] sm:$0xff] }
   0x7   :  { %312 = vmatprep.subr.bf16.mxu1 %v324_v0  ;;  %v304_v25 = vpack.c.bf16 %v30_v23, %v29_v22  ;;  %v307_v28 = vpack.c.bf16 %v32_v27, %v31_v26  ;;  %v33_v29 = vld [vmem:[%s432_s1 + $0x60] sm:$0xf]  ;;  %v126_v31 = vld [vmem:[%s433_s3 + $0x30] sm:$0xff]  ;;  %v127_v32 = vld [vmem:[%s433_s3 + $0x38] sm:$0xff] }
   0x8   :  { %296 = vmatpush3.bf16.msra.mxu0 %v295_v7  ;;  %v20_v30 = vld [vmem:[%s434_s0] sm:$0xff]  ;;  %v319_v33 = vpack.c.bf16 %v127_v32, %v126_v31 }
   0x9   :  { %297 = vmatprep.subr.bf16.mxu0 %v324_v0  ;;  %v215_v34 = vld [vmem:[%s435_s2] ss:$0 sm:$0xff] }
   0xa   :  { %314 = vmatpush3.bf16.msra.mxu1 %v313_v18  ;;  %v218_v39 = vld [vmem:[%s436_s4] ss:$0 sm:$0xff] }
   0xb   :  { %315 = vmatprep.subr.bf16.mxu1 %v324_v0 }
   0xc   :  { %299 = vmatpush3.bf16.msra.mxu0 %v298_v15 }
   0xd   :  { %300 = vmatprep.subr.bf16.mxu0 %v324_v0 }
   0xe   :  { %317 = vmatpush3.bf16.msra.mxu1 %v316_v24 }
   0xf   :  { %318 = vmatprep.subr.bf16.mxu1 %v324_v0 }
  0x10   :  { %302 = vmatpush3.bf16.msra.mxu0 %v301_v21 }
  0x11   :  { %303 = vmatprep.subr.bf16.mxu0 %v324_v0 }
  0x12   :  { %320 = vmatpush3.bf16.msra.mxu1 %v319_v33 }
  0x14   :  { %305 = vmatpush3.bf16.msra.mxu0 %v304_v25 }
  0x15   :  { %306 = vmatprep.subr.bf16.mxu0 %v324_v0 }
  0x18   :  { %308 = vmatpush3.bf16.msra.mxu0 %v307_v28 }
  0x19   :  { %267 = vmatprep.subr.mxu0 %v326_v4 }
  0x1c   :  { %268 = vmatpush3.msk.msra.mxu0 %vm45_vm1, %v33_v29 }
  0x1d   :  { %270 = vmatmul.mubr.msk.f32.vlgmr.msra.gmra.mrb[0].mxu0 %vm41_vm2, %v20_v30 }
  0xf0   :  { %v115_v35 = vpop.f32.mrb[0].mxu0 }
  0xf1   :  { %v116_v36 = vadd.f32 %v215_v34, %v115_v35  ;;  %v271_v37 = vpop.f32.mrb[1].mxu0 }
  0xf3   :  { %v119_v38 = vmax.f32 %v116_v36, 0.0 }
  0xf5   :  { %289 = vmatmul.mubr.msk.f32.vlgmr.msra.gmra.mrb[0].mxu1 %vm135_vm3, %v119_v38 }
 0x1c8   :  { %v205_v40 = vpop.f32.mrb[0].mxu1 }
 0x1c9   :  { %v206_v41 = vadd.f32 %v218_v39, %v205_v40  ;;  %v290_v42 = vpop.f32.mrb[1].mxu1 }
 0x1cb   :  { %210 = vst.msk [vmem:[%s437_s5] sm:$0xff] %vm209_vm4, %v206_v41 }

</bundles_post_ra>
